<compile_context>
chip_gen: v5e
topology: v5e:2x2
jax: 0.10.0
libtpu: 0.0.40
codegen_flags: <defaults>
</compile_context>

<pallas_src>
import functools

import jax
import jax.numpy as jnp
from jax import lax
from jax.experimental import pallas as pl
from jax.experimental.pallas import tpu as pltpu

_EPS = 0.1


def _round_up(x, m):
    return ((x + m - 1) // m) * m


def _nrtr_smooth_loss_kernel(logits_ref, tgt_ref, out_ref, acc_ref, *, n_rows):
    """One (TN, C) row tile of smoothed CE with ignore_index=0.

    logits_ref: (TN, C) VMEM, any float dtype (cast to f32 per tile)
    tgt_ref:    (TN, 1) int32 VMEM
    out_ref:    (1, 2)  f32 SMEM block -> (partial_total, partial_count)
    acc_ref:    (2,)    f32 SMEM scratch -> running (total, count)
    """
    c_id = pl.program_id(0)           # parallel split (per-core partials)
    t_id = pl.program_id(1)           # reduction axis over row tiles
    n_t = pl.num_programs(1)

    @pl.when(t_id == 0)
    def _init():
        acc_ref[0] = 0.0
        acc_ref[1] = 0.0

    x = logits_ref[...].astype(jnp.float32)          # (TN, C)
    tgt = tgt_ref[...]                               # (TN, 1) int32
    TN, C = x.shape

    # Row-wise log-softmax pieces (one exp pass + lane reductions).
    m = jnp.max(x, axis=1, keepdims=True)            # (TN, 1)
    z = x - m                                        # (TN, C)
    lse = jnp.log(jnp.sum(jnp.exp(z), axis=1, keepdims=True))     # (TN, 1)

    # sum over classes of log_softmax = sum(z) - C * lse
    sum_log_prb = jnp.sum(z, axis=1, keepdims=True) - C * lse     # (TN, 1)

    # log_softmax at the target class, gathered via a lane-iota compare.
    cols = lax.broadcasted_iota(jnp.int32, (TN, C), 1)
    z_tgt = jnp.sum(jnp.where(cols == tgt, z, 0.0), axis=1, keepdims=True)
    lp_tgt = z_tgt - lse                                          # (TN, 1)

    # smoothed CE: -( (1-eps)*lp_tgt + eps/(C-1) * (sum_lp - lp_tgt) )
    u = _EPS / (C - 1)
    per_row = -((1.0 - _EPS - u) * lp_tgt + u * sum_log_prb)      # (TN, 1)

    # Valid = non-pad target AND a real (in-bounds, non-duplicated) row.
    # Use select (not multiply) so garbage rows can never inject NaN/Inf.
    row0 = (c_id * n_t + t_id) * TN
    rows = row0 + lax.broadcasted_iota(jnp.int32, (TN, 1), 0)
    valid = jnp.logical_and(tgt != 0, rows < n_rows)
    acc_ref[0] = acc_ref[0] + jnp.sum(jnp.where(valid, per_row, 0.0))
    acc_ref[1] = acc_ref[1] + jnp.sum(valid.astype(jnp.float32))

    @pl.when(t_id == n_t - 1)
    def _finalize():
        out_ref[0, 0] = acc_ref[0]
        out_ref[0, 1] = acc_ref[1]


def nrtr_smoothed_loss(logits_flat, tgt_flat, *, tile_rows=None, row_split=2):
    """logits_flat: (N, C) float (f32 or bf16); tgt_flat: (N,) int -> scalar loss."""
    N, C = logits_flat.shape
    tgt2d = tgt_flat.reshape(N, 1).astype(jnp.int32)
    itemsize = jnp.dtype(logits_flat.dtype).itemsize

    # Row tile: multiple of 8, sized so double-buffered input tiles plus in-
    # kernel f32 temporaries stay well inside scoped VMEM on every generation
    # (v7x has only 64 MiB physical per TensorCore).
    if tile_rows is None:
        budget = 12 * 1024 * 1024
        tn = budget // (2 * C * max(itemsize, 4))
        tn = max(8, min(1024, (tn // 8) * 8))
    else:
        tn = max(8, (int(tile_rows) // 8) * 8)
    tn = min(tn, _round_up(N, 8))

    n_tiles = pl.cdiv(N, tn)
    split = row_split if n_tiles >= row_split else 1
    tiles_per = pl.cdiv(n_tiles, split)

    # Clamp the block index so the (possible) excess tile of the last split
    # re-reads a real tile; its logical rows are >= N and get masked in-kernel.
    def _block_idx(c, i):
        return jnp.minimum(c * tiles_per + i, n_tiles - 1)

    vmem_limit = int(min(
        56 * 1024 * 1024,
        max(32 * 1024 * 1024,
            2 * tn * C * itemsize + 6 * tn * C * 4 + (1 << 20))))

    kernel = functools.partial(_nrtr_smooth_loss_kernel, n_rows=N)

    partials = pl.pallas_call(
        kernel,
        out_shape=jax.ShapeDtypeStruct((split, 2), jnp.float32),
        grid_spec=pltpu.PrefetchScalarGridSpec(
            num_scalar_prefetch=0,
            grid=(split, tiles_per),
            in_specs=[
                pl.BlockSpec((tn, C), lambda c, i: (_block_idx(c, i), 0)),
                pl.BlockSpec((tn, 1), lambda c, i: (_block_idx(c, i), 0)),
            ],
            out_specs=pl.BlockSpec((1, 2), lambda c, i: (c, 0),
                                   memory_space=pltpu.MemorySpace.SMEM),
            scratch_shapes=[pltpu.SMEM((2,), jnp.float32)],
        ),
        compiler_params=pltpu.CompilerParams(
            dimension_semantics=("parallel", "arbitrary"),
            vmem_limit_bytes=vmem_limit,
        ),
    )(logits_flat, tgt2d)

    total = jnp.sum(partials[:, 0])
    cnt = jnp.sum(partials[:, 1])
    # NOTE: cnt == 0 (all-padding batch) yields NaN, matching the PyTorch
    # original's masked_select(...).mean() on an empty selection.
    return total / cnt


def nrtr_loss_forward(logits, labels, **kwargs):
    """Mirrors NRTRLoss.forward for smoothing=True.

    logits: (B, T, n_class) with T == max_len + 1.
    labels: PaddleOCR-style tuple; labels[1] = (B, T_full) int ids (T_full >= T+1).
    The target slice width is taken statically from logits.shape[1] (it equals
    labels[2].max() + 1 by construction), keeping the whole forward jittable —
    padded rows have tgt == 0 and are dropped by the ignore mask.
    """
    B, T, C = logits.shape
    tgt = labels[1][:, 1:T + 1].reshape(-1)
    logits2d = logits.reshape(-1, C)
    return nrtr_smoothed_loss(logits2d, tgt, **kwargs)


def _reference_loss(logits, labels):
    """Pure-JAX reference of the smoothing branch, for validation."""
    B, T, C = logits.shape
    tgt = labels[1][:, 1:T + 1].reshape(-1)
    x = logits.reshape(-1, C).astype(jnp.float32)
    eps = 0.1
    one_hot = jax.nn.one_hot(tgt, C, dtype=jnp.float32)
    one_hot = one_hot * (1 - eps) + (1 - one_hot) * eps / (C - 1)
    log_prb = jax.nn.log_softmax(x, axis=1)
    mask = tgt != 0
    loss = -(one_hot * log_prb).sum(axis=1)
    return jnp.sum(jnp.where(mask, loss, 0.0)) / jnp.sum(mask.astype(jnp.float32))


def _make_batch(key, B, n_class, T_full, lengths):
    k1, k2 = jax.random.split(key)
    max_len = int(jnp.max(lengths))
    T = max_len + 1
    ids = jax.random.randint(k1, (B, T_full), 1, n_class, dtype=jnp.int32)
    pos = jnp.arange(T_full)[None, :]
    label_ids = jnp.where(pos <= lengths[:, None] + 1, ids, 0).astype(jnp.int32)
    labels = (None, label_ids, lengths)
    logits = jax.random.normal(k2, (B, T, n_class), dtype=jnp.float32)
    return logits, labels


if __name__ == "__main__":
    key = jax.random.PRNGKey(0)
    ka, kb = jax.random.split(key)

    # --- test 1: small batch, f32 logits, single tile, jitted end-to-end ---
    lengths1 = jnp.array([5, 7], dtype=jnp.int32)
    logits1, labels1 = _make_batch(ka, B=2, n_class=32, T_full=10, lengths=lengths1)
    loss1 = jax.jit(nrtr_loss_forward)(logits1, labels1)
    jax.block_until_ready(loss1)
    ref1 = _reference_loss(logits1, labels1)
    assert jnp.allclose(loss1, ref1, rtol=1e-5, atol=1e-5), (loss1, ref1)

    # --- test 2: bf16 logits, forced small row tile -> multi-tile accumulator
    #     grid, 2-way row split with a clamped excess tile and a partially
    #     out-of-bounds last tile (N = 18, TN = 8) ---
    lengths2 = jnp.array([3, 5, 4], dtype=jnp.int32)
    logits2, labels2 = _make_batch(kb, B=3, n_class=64, T_full=8, lengths=lengths2)
    logits2_bf16 = logits2.astype(jnp.bfloat16)
    loss2 = nrtr_loss_forward(logits2_bf16, labels2, tile_rows=8, row_split=2)
    jax.block_until_ready(loss2)
    ref2 = _reference_loss(logits2_bf16, labels2)
    assert jnp.allclose(loss2, ref2, rtol=1e-4, atol=1e-4), (loss2, ref2)

    print("KERNEL_OK")
</pallas_src>

<mosaic_0001>
module attributes {stable_mosaic.version = 11 : i64} {
  func.func @_nrtr_smooth_loss_kernel(%arg0: i32, %arg1: i32, %arg2: memref<16x32xf32, #tpu.memory_space<vmem>>, %arg3: memref<16x1xi32, #tpu.memory_space<vmem>>, %arg4: memref<1x2xf32, #tpu.memory_space<smem>>, %arg5: memref<2xf32, #tpu.memory_space<smem>>) attributes {dimension_semantics = [#tpu.dimension_semantics<parallel>, #tpu.dimension_semantics<arbitrary>], iteration_bounds = array<i64: 1, 1>, scalar_prefetch = 0 : i64, scratch_operands = 1 : i64, tpu.core_type = #tpu.core_type<tc>, window_params = [{transform_indices = @transform_0, window_bounds = array<i64: 16, 32>}, {transform_indices = @transform_1, window_bounds = array<i64: 16, 1>}, {transform_indices = @transform_2, window_bounds = array<i64: 1, 2>}]} {
    %c0_i32 = arith.constant 0 : i32
    %0 = arith.cmpi eq, %arg1, %c0_i32 : i32
    %1 = arith.extui %0 : i1 to i32
    %c0_i32_0 = arith.constant 0 : i32
    %2 = arith.cmpi ne, %1, %c0_i32_0 : i32
    scf.if %2 {
      %cst_22 = arith.constant 0.000000e+00 : f32
      %c0_23 = arith.constant 0 : index
      %65 = memref.load %arg5[%c0_23] : memref<2xf32, #tpu.memory_space<smem>>
      memref.store %cst_22, %arg5[%c0_23] : memref<2xf32, #tpu.memory_space<smem>>
      %cst_24 = arith.constant 0.000000e+00 : f32
      %c1_25 = arith.constant 1 : index
      %66 = memref.load %arg5[%c1_25] : memref<2xf32, #tpu.memory_space<smem>>
      memref.store %cst_24, %arg5[%c1_25] : memref<2xf32, #tpu.memory_space<smem>>
    } else {
    }
    %c0 = arith.constant 0 : index
    %c0_1 = arith.constant 0 : index
    %3 = vector.load %arg2[%c0, %c0_1] : memref<16x32xf32, #tpu.memory_space<vmem>>, vector<16x32xf32>
    %c0_2 = arith.constant 0 : index
    %c0_3 = arith.constant 0 : index
    %4 = vector.load %arg3[%c0_2, %c0_3] : memref<16x1xi32, #tpu.memory_space<vmem>>, vector<16x1xi32>
    %cst = arith.constant dense<0xFF800000> : vector<16xf32>
    %5 = vector.multi_reduction <maximumf>, %3, %cst [1] : vector<16x32xf32> to vector<16xf32>
    %6 = vector.shape_cast %5 : vector<16xf32> to vector<16x1xf32>
    %7 = vector.broadcast %6 : vector<16x1xf32> to vector<16x32xf32>
    %8 = arith.subf %3, %7 : vector<16x32xf32>
    %9 = math.exp %8 : vector<16x32xf32>
    %cst_4 = arith.constant dense<0.000000e+00> : vector<16xf32>
    %10 = vector.multi_reduction <add>, %9, %cst_4 [1] : vector<16x32xf32> to vector<16xf32>
    %11 = vector.shape_cast %10 : vector<16xf32> to vector<16x1xf32>
    %12 = math.log %11 : vector<16x1xf32>
    %cst_5 = arith.constant dense<0.000000e+00> : vector<16xf32>
    %13 = vector.multi_reduction <add>, %8, %cst_5 [1] : vector<16x32xf32> to vector<16xf32>
    %14 = vector.shape_cast %13 : vector<16xf32> to vector<16x1xf32>
    %cst_6 = arith.constant 3.200000e+01 : f32
    %15 = vector.broadcast %cst_6 : f32 to vector<16x1xf32>
    %16 = arith.mulf %15, %12 : vector<16x1xf32>
    %17 = arith.subf %14, %16 : vector<16x1xf32>
    %18 = tpu.iota {dimensions = array<i32: 1>} : vector<16x32xi32>
    %19 = vector.broadcast %4 : vector<16x1xi32> to vector<16x32xi32>
    %20 = arith.cmpi eq, %18, %19 : vector<16x32xi32>
    %cst_7 = arith.constant 0.000000e+00 : f32
    %21 = vector.broadcast %cst_7 : f32 to vector<16x32xf32>
    %22 = arith.select %20, %8, %21 : vector<16x32xi1>, vector<16x32xf32>
    %cst_8 = arith.constant dense<0.000000e+00> : vector<16xf32>
    %23 = vector.multi_reduction <add>, %22, %cst_8 [1] : vector<16x32xf32> to vector<16xf32>
    %24 = vector.shape_cast %23 : vector<16xf32> to vector<16x1xf32>
    %25 = arith.subf %24, %12 : vector<16x1xf32>
    %cst_9 = arith.constant 0.896774172 : f32
    %26 = vector.broadcast %cst_9 : f32 to vector<16x1xf32>
    %27 = arith.mulf %26, %25 : vector<16x1xf32>
    %cst_10 = arith.constant 0.0032258064 : f32
    %28 = vector.broadcast %cst_10 : f32 to vector<16x1xf32>
    %29 = arith.mulf %28, %17 : vector<16x1xf32>
    %30 = arith.addf %27, %29 : vector<16x1xf32>
    %cst_11 = arith.constant 0.000000e+00 : f32
    %31 = vector.broadcast %cst_11 : f32 to vector<16x1xf32>
    %32 = arith.subf %31, %30 : vector<16x1xf32>
    %c1_i32 = arith.constant 1 : i32
    %33 = arith.muli %arg0, %c1_i32 : i32
    %34 = arith.addi %33, %arg1 : i32
    %c16_i32 = arith.constant 16 : i32
    %35 = arith.muli %34, %c16_i32 : i32
    %36 = tpu.iota {dimensions = array<i32: 0>} : vector<16x1xi32>
    %37 = vector.broadcast %35 : i32 to vector<16x1xi32>
    %38 = arith.addi %37, %36 : vector<16x1xi32>
    %c0_i32_12 = arith.constant 0 : i32
    %39 = vector.broadcast %c0_i32_12 : i32 to vector<16x1xi32>
    %40 = arith.cmpi ne, %4, %39 : vector<16x1xi32>
    %c16_i32_13 = arith.constant 16 : i32
    %41 = vector.broadcast %c16_i32_13 : i32 to vector<16x1xi32>
    %42 = arith.cmpi slt, %38, %41 : vector<16x1xi32>
    %43 = arith.andi %40, %42 : vector<16x1xi1>
    %c0_14 = arith.constant 0 : index
    %44 = memref.load %arg5[%c0_14] : memref<2xf32, #tpu.memory_space<smem>>
    %cst_15 = arith.constant 0.000000e+00 : f32
    %45 = vector.broadcast %cst_15 : f32 to vector<16x1xf32>
    %46 = arith.select %43, %32, %45 : vector<16x1xi1>, vector<16x1xf32>
    %47 = vector.shape_cast %46 : vector<16x1xf32> to vector<1x16x1xf32>
    %cst_16 = arith.constant dense<0.000000e+00> : vector<1xf32>
    %48 = vector.multi_reduction <add>, %47, %cst_16 [1, 2] : vector<1x16x1xf32> to vector<1xf32>
    %49 = vector.shape_cast %48 : vector<1xf32> to vector<1x1x1xf32>
    %50 = vector.extract %49[0, 0, 0] : f32 from vector<1x1x1xf32>
    %51 = arith.addf %44, %50 : f32
    %c0_17 = arith.constant 0 : index
    %52 = memref.load %arg5[%c0_17] : memref<2xf32, #tpu.memory_space<smem>>
    memref.store %51, %arg5[%c0_17] : memref<2xf32, #tpu.memory_space<smem>>
    %c1 = arith.constant 1 : index
    %53 = memref.load %arg5[%c1] : memref<2xf32, #tpu.memory_space<smem>>
    %54 = arith.extui %43 : vector<16x1xi1> to vector<16x1xi32>
    %55 = arith.sitofp %54 : vector<16x1xi32> to vector<16x1xf32>
    %56 = vector.shape_cast %55 : vector<16x1xf32> to vector<1x16x1xf32>
    %cst_18 = arith.constant dense<0.000000e+00> : vector<1xf32>
    %57 = vector.multi_reduction <add>, %56, %cst_18 [1, 2] : vector<1x16x1xf32> to vector<1xf32>
    %58 = vector.shape_cast %57 : vector<1xf32> to vector<1x1x1xf32>
    %59 = vector.extract %58[0, 0, 0] : f32 from vector<1x1x1xf32>
    %60 = arith.addf %53, %59 : f32
    %c1_19 = arith.constant 1 : index
    %61 = memref.load %arg5[%c1_19] : memref<2xf32, #tpu.memory_space<smem>>
    memref.store %60, %arg5[%c1_19] : memref<2xf32, #tpu.memory_space<smem>>
    %c0_i32_20 = arith.constant 0 : i32
    %62 = arith.cmpi eq, %arg1, %c0_i32_20 : i32
    %63 = arith.extui %62 : i1 to i32
    %c0_i32_21 = arith.constant 0 : i32
    %64 = arith.cmpi ne, %63, %c0_i32_21 : i32
    scf.if %64 {
      %c0_22 = arith.constant 0 : index
      %65 = memref.load %arg5[%c0_22] : memref<2xf32, #tpu.memory_space<smem>>
      %c0_23 = arith.constant 0 : index
      %c0_24 = arith.constant 0 : index
      %66 = memref.load %arg4[%c0_23, %c0_24] : memref<1x2xf32, #tpu.memory_space<smem>>
      memref.store %65, %arg4[%c0_23, %c0_24] : memref<1x2xf32, #tpu.memory_space<smem>>
      %c1_25 = arith.constant 1 : index
      %67 = memref.load %arg5[%c1_25] : memref<2xf32, #tpu.memory_space<smem>>
      %c0_26 = arith.constant 0 : index
      %c1_27 = arith.constant 1 : index
      %68 = memref.load %arg4[%c0_26, %c1_27] : memref<1x2xf32, #tpu.memory_space<smem>>
      memref.store %67, %arg4[%c0_26, %c1_27] : memref<1x2xf32, #tpu.memory_space<smem>>
    } else {
    }
    return
  }
  func.func @transform_0(%arg0: i32, %arg1: i32) -> (i32, i32) {
    %c1_i32 = arith.constant 1 : i32
    %0 = arith.muli %arg0, %c1_i32 : i32
    %1 = arith.addi %0, %arg1 : i32
    %c0_i32 = arith.constant 0 : i32
    %2 = arith.minsi %1, %c0_i32 : i32
    %c0_i32_0 = arith.constant 0 : i32
    %c0_i32_1 = arith.constant 0 : i32
    return %2, %c0_i32_0 : i32, i32
  }
  func.func @transform_1(%arg0: i32, %arg1: i32) -> (i32, i32) {
    %c1_i32 = arith.constant 1 : i32
    %0 = arith.muli %arg0, %c1_i32 : i32
    %1 = arith.addi %0, %arg1 : i32
    %c0_i32 = arith.constant 0 : i32
    %2 = arith.minsi %1, %c0_i32 : i32
    %c0_i32_0 = arith.constant 0 : i32
    %c0_i32_1 = arith.constant 0 : i32
    return %2, %c0_i32_0 : i32, i32
  }
  func.func @transform_2(%arg0: i32, %arg1: i32) -> (i32, i32) {
    %c0_i32 = arith.constant 0 : i32
    %c0_i32_0 = arith.constant 0 : i32
    return %arg0, %c0_i32 : i32, i32
  }
}

</mosaic_0001>

<bundles_post_ra>
// kernel: nrtr_loss_forward.1
= control target key start
LH: loop header
LB: loop body
LE: loop exit
PB: predicated region body
PF: predicated region fallthrough
CT: control target
= control target key end

     0   :  { %vm88_vm0 = vcmask 261120   ;;  %v273_v3 = vmov 0   ;;  %s334_s0 = inlined_call_operand.vmem [shape: f32[16,32], index: 0, kind: input, shape index: {}]   ;;  %s335_s1 = inlined_call_operand.vmem [shape: s32[16,1], index: 1, kind: input, shape index: {}]   ;;  %s336_s2 = inlined_call_operand.vmem [shape: f32[1,2], index: 2, kind: output, shape index: {}]  }
   0x1   :  { %v84_v0 = vld [vmem:[%s334_s0] sm:$0xff]  ;;  %249 = vset.pattern.permute.xlu1 %v273_v3  ;;  %250 = vset.pattern.permute.xlu0 %v273_v3 }
   0x2   :  { %v297_v1 = vld [vmem:[%s335_s1] sm:$0xff]  ;;  %v89_v2 = vsel %vm88_vm0, %v84_v0, -inf }
   0x3   :  { %7 = vsyncpa [#allocation4], 0  ;;  %90 = vmax.xlane.f32.xlu0 %v89_v2  ;;  %124 = vperm.xlu1 %249, %v297_v1   ;;  %v85_v4 = vld [vmem:[%s334_s0 + $0x8] sm:$0xff]  ;;  %v121_v10 = vlaneseq  ;;  %vm157_vm3 = vcmp.ne.s32.totalorder %v297_v1, 0  ;;  %v274_v27 = vmov 0.0   ;;  %vm166_vm5 = vcmask 7168  }
   0x4   :  { %v92_v5 = vsel %vm88_vm0, %v85_v4, -inf  ;;  %v308_v6 = vld [vmem:[%s335_s1 + $0x8] sm:$0xff]  ;;  %v239_v28 = vsel %vm157_vm3, 1.0, %v274_v27  ;;  %s216_s17 = sshll.u32 %s336_s2, 4  ;;  %s275_s20 = smov [#allocation3]   ;;  %s217_s17 = int_to_ptr.vmem [resolvable:$true] %s216_s17 }
   0x5   :  { %v122_v13 = vand.u32 127, %v121_v10  ;;  %vm158_vm4 = vcmp.ne.s32.totalorder %v308_v6, 0  ;;  %v187_v30 = vsel %vm166_vm5, %v239_v28, 0.0 }
   0x6   :  { %v240_v29 = vsel %vm158_vm4, 1.0, %v274_v27 }
   0x7   :  { %v188_v31 = vsel %vm166_vm5, %v240_v29, 0.0 }
   0x8   :  { %v189_v32 = vadd.f32 %v188_v31, %v187_v30 }
   0xb   :  { %93 = vmax.xlane.f32.xlu0 %v92_v5  ;;  %127 = vperm.xlu1 %249, %v308_v6  }
  0x75   :  { %v125_v7 = vpop.permute.xlu1 %124 }
  0x76   :  { %v91_v8 = vpop.xlane.xlu0 %90  ;;  %vm129_vm2 = vcmp.eq.s32.totalorder %v122_v13, %v125_v7 }
  0x77   :  { %v95_v9 = vsub.f32 %v84_v0, %v91_v8 }
  0x79   :  { %v97_v11 = vmul.f32 1.442695, %v95_v9  ;;  %v111_v12 = vsel %vm88_vm0, %v95_v9, 0.0  ;;  %v131_v25 = vsel %vm129_vm2, %v95_v9, 0.0 }
  0x7a   :  { %112 = vadd.xlane.f32.xlu0 %v111_v12  ;;  %v133_v26 = vsel %vm88_vm0, %v131_v25, 0.0 }
  0x7b   :  { %251 = vpow2.f32 %v97_v11 }
  0x7d   :  { %v128_v14 = vpop.permute.xlu1 %127 }
  0x7e   :  { %v94_v15 = vpop.xlane.xlu0 %93  ;;  %vm130_vm1 = vcmp.eq.s32.totalorder %v122_v13, %v128_v14 }
  0x7f   :  { %v96_v16 = vsub.f32 %v85_v4, %v94_v15 }
  0x81   :  { %v252_v17 = vpop.eup %251  ;;  %v99_v18 = vmul.f32 1.442695, %v96_v16  ;;  %v114_v19 = vsel %vm88_vm0, %v96_v16, 0.0  ;;  %v132_v20 = vsel %vm130_vm1, %v96_v16, 0.0 }
  0x82   :  { %115 = vadd.xlane.f32.xlu1 %v114_v19  ;;  %v101_v21 = vsel %vm88_vm0, %v252_v17, 0.0  ;;  %v136_v22 = vsel %vm88_vm0, %v132_v20, 0.0 }
  0x83   :  { %253 = vpow2.f32 %v99_v18  ;;  %102 = vadd.xlane.f32.xlu2 %v101_v21  ;;  %137 = vadd.xlane.f32.xlu0 %v136_v22 }
  0x89   :  { %v254_v23 = vpop.eup %253 }
  0x8a   :  { %v104_v24 = vsel %vm88_vm0, %v254_v23, 0.0 }
  0x8b   :  { %105 = vadd.xlane.f32.xlu2 %v104_v24  ;;  %190 = vadd.xlane.f32.xlu0 %v189_v32 }
  0x93   :  { %134 = vadd.xlane.f32.xlu2 %v133_v26 }
  0xed   :  { %v113_v35 = vpop.xlane.xlu0 %112 }
  0xf5   :  { %v116_v47 = vpop.xlane.xlu1 %115 }
  0xf6   :  { %v103_v33 = vpop.xlane.xlu2 %102  ;;  %v138_v43 = vpop.xlane.xlu0 %137 }
  0xf7   :  { %255 = vlog2.f32 %v103_v33 }
  0xfd   :  { %v256_v34 = vpop.eup %255 }
  0xfe   :  { %v108_v36 = vmul.f32 0.6931472, %v256_v34  ;;  %v106_v37 = vpop.xlane.xlu2 %105  ;;  %v191_v62 = vpop.xlane.xlu0 %190 }
  0xff   :  { %257 = vlog2.f32 %v106_v37  ;;  %v192_v63 = vrot.slane %v191_v62, 4 }
 0x100   :  { %v117_v38 = vmul.f32 32.0, %v108_v36 }
 0x101   :  { %v193_v0 = vadd.f32 %v192_v63, %v191_v62 }
 0x102   :  { %v119_v40 = vsub.f32 %v113_v35, %v117_v38 }
 0x103   :  { %v194_v2 = vrot.slane %v193_v0, 2 }
 0x104   :  { %v143_v49 = vmul.f32 0.0032258064, %v119_v40 }
 0x105   :  { %v258_v39 = vpop.eup %257  ;;  %v195_v7 = vadd.f32 %v194_v2, %v193_v0 }
 0x106   :  { %v110_v41 = vmul.f32 0.6931472, %v258_v39  ;;  %v135_v42 = vpop.xlane.xlu2 %134 }
 0x107   :  { %v139_v44 = vsub.f32 %v135_v42, %v108_v36  ;;  %v196_v9 = vrot.slane %v195_v7, 1 }
 0x108   :  { %v118_v45 = vmul.f32 32.0, %v110_v41  ;;  %v140_v46 = vsub.f32 %v138_v43, %v110_v41 }
 0x109   :  { %v141_v48 = vmul.f32 0.8967742, %v139_v44  ;;  %v197_v11 = vadd.f32 %v196_v9, %v195_v7 }
 0x10a   :  { %v120_v50 = vsub.f32 %v116_v47, %v118_v45  ;;  %v142_v52 = vmul.f32 0.8967742, %v140_v46 }
 0x10b   :  { %v145_v51 = vadd.f32 %v143_v49, %v141_v48 }
 0x10c   :  { %v144_v53 = vmul.f32 0.0032258064, %v120_v50 }
 0x10d   :  { %v147_v54 = vsub.f32 0.0, %v145_v51 }
 0x10e   :  { %v146_v55 = vadd.f32 %v144_v53, %v142_v52 }
 0x10f   :  { %v164_v57 = vsel %vm157_vm3, %v147_v54, 0.0 }
 0x110   :  { %v148_v56 = vsub.f32 0.0, %v146_v55  ;;  %v167_v59 = vsel %vm166_vm5, %v164_v57, 0.0 }
 0x112   :  { %v165_v58 = vsel %vm158_vm4, %v148_v56, 0.0 }
 0x113   :  { %v168_v60 = vsel %vm166_vm5, %v165_v58, 0.0 }
 0x114   :  { %v169_v61 = vadd.f32 %v168_v60, %v167_v59 }
 0x116   :  { %170 = vadd.xlane.f32.xlu2 %v169_v61 }
 0x189   :  { %v171_v3 = vpop.xlane.xlu2 %170 }
 0x18a   :  { %v172_v4 = vrot.slane %v171_v3, 4 }
 0x18c   :  { %v173_v5 = vadd.f32 %v172_v4, %v171_v3 }
 0x18e   :  { %v174_v8 = vrot.slane %v173_v5, 2 }
 0x190   :  { %v175_v1 = vadd.f32 %v174_v8, %v173_v5 }
 0x192   :  { %v176_v10 = vrot.slane %v175_v1, 1 }
 0x194   :  { %v177_v6 = vadd.f32 %v176_v10, %v175_v1 }
 0x196   :  { %242 = vpush %v177_v6 }
 0x197   :  { %244 = vpush %v197_v11 }
 0x1c7   :  { %s243_s18 = spop %242 }
 0x1c8   :  { %207 = sst [smem:[#allocation3]] %s243_s18  ;;  %s245_s19 = spop %244 }
 0x1c9   :  { %210 = sst [smem:[#allocation3 + $0x1]] %s245_s19 }
 0x1ca   :  { %219 = dma.smem_to_vmem %s275_s20, 16, %s217_s17, [#allocation4]  }
 0x1cb   :  { %271 = dma.done.wait [#allocation4], 16  }
 0x1cc   :  { %272 = vsyncadd [#allocation4], 4294967280 }
 0x1cd   :  { %224 = sfence }
 0x1ce   :  { %225 = vsyncpa [#allocation4], 1 }

</bundles_post_ra>
